<compile_context>
chip_gen: v5e
topology: v5e:2x2
jax: 0.10.0
libtpu: 0.0.40
codegen_flags: <defaults>
</compile_context>

<pallas_src>
import jax
import jax.numpy as jnp
from jax.experimental import pallas as pl
from jax.experimental.pallas import tpu as pltpu


NPAD = 128                      # lane-padded Cout
TILE_M = 512                    # rows of the im2col matrix per grid step
_LAYER_CFG = ((8, 4, 32), (4, 2, 64), (3, 1, 64))   # (kernel, stride, cout)


def _round_up(x, m):
    return (x + m - 1) // m * m


# ----------------------------- Pallas kernel ------------------------------ #
def _matmul_bias_relu_kernel(x_ref, w_ref, b_ref, o_ref):
    # bf16 x bf16 on the MXU, f32 accumulate; bias + ReLU on the f32 accumulator.
    acc = jnp.dot(x_ref[...], w_ref[...], preferred_element_type=jnp.float32)
    acc = acc + b_ref[...]                       # (1, NPAD) broadcasts over rows
    o_ref[...] = jnp.maximum(acc, 0.0).astype(o_ref.dtype)


def matmul_bias_relu(x2d, w2d_pad, b2d_pad, n_valid, out_dtype, tile_m=TILE_M):
    """(M,K) @ (K,NPAD) + bias, ReLU.  M tiled over a 1-D parallel grid."""
    M, K = x2d.shape
    Kw, npad = w2d_pad.shape
    assert K == Kw and npad == NPAD

    x2d = x2d.astype(jnp.bfloat16)

    # Pick a tile that is a multiple of 16 sublanes (bf16 packing) and pad M so
    # the grid divides evenly (padded rows are zeros and get sliced off).
    tm = min(tile_m, _round_up(M, 16))
    m_pad = _round_up(M, tm)
    if m_pad != M:
        x2d = jnp.pad(x2d, ((0, m_pad - M), (0, 0)))
    grid = (m_pad // tm,)

    out_bytes = m_pad * NPAD * jnp.dtype(out_dtype).itemsize
    cost = pl.CostEstimate(
        flops=2 * m_pad * K * NPAD,
        transcendentals=0,
        bytes_accessed=m_pad * K * 2 + K * NPAD * 2 + NPAD * 4 + out_bytes,
    )

    out = pl.pallas_call(
        _matmul_bias_relu_kernel,
        out_shape=jax.ShapeDtypeStruct((m_pad, NPAD), out_dtype),
        grid=grid,
        in_specs=[
            pl.BlockSpec((tm, K), lambda i: (i, 0)),       # streamed over M
            pl.BlockSpec((K, NPAD), lambda i: (0, 0)),     # VMEM-resident weights
            pl.BlockSpec((1, NPAD), lambda i: (0, 0)),     # VMEM-resident bias
        ],
        out_specs=pl.BlockSpec((tm, NPAD), lambda i: (i, 0)),
        compiler_params=pltpu.CompilerParams(dimension_semantics=("parallel",)),
        cost_estimate=cost,
    )(x2d, w2d_pad, b2d_pad)

    return out[:M, :n_valid]


# ------------------------------ Conv wrapper ------------------------------ #
def _extract_patches_nhwc(x, k, s):
    """im2col with last-dim ordering (kh, kw, cin); stride s, VALID padding."""
    N, H, W, C = x.shape
    OH = (H - k) // s + 1
    OW = (W - k) // s + 1
    cols = []
    for kh in range(k):
        for kw in range(k):
            cols.append(x[:, kh:kh + s * OH:s, kw:kw + s * OW:s, :])
    return jnp.concatenate(cols, axis=-1), OH, OW      # (N, OH, OW, k*k*C)


def conv2d_relu_nhwc(x_nhwc, w2d_pad, b2d_pad, k, stride, cout, out_dtype):
    """NHWC conv (pre-packed weights) + bias + ReLU via the Pallas matmul."""
    N, _, _, Cin = x_nhwc.shape
    patches, OH, OW = _extract_patches_nhwc(x_nhwc, k, stride)
    x2d = patches.reshape(N * OH * OW, k * k * Cin)
    y2d = matmul_bias_relu(x2d, w2d_pad, b2d_pad, cout, out_dtype)
    return y2d.reshape(N, OH, OW, cout)


def nature_cnn_forward(x_nchw, layer_params):
    """Forward pass equivalent to NatureCNN.forward (input NCHW, output (N, F))."""
    x = jnp.transpose(x_nchw, (0, 2, 3, 1)).astype(jnp.bfloat16)   # NCHW -> NHWC
    last = len(_LAYER_CFG) - 1
    for idx, ((k, s, cout), p) in enumerate(zip(_LAYER_CFG, layer_params)):
        out_dtype = jnp.float32 if idx == last else jnp.bfloat16
        x = conv2d_relu_nhwc(x, p["w2d"], p["b2d"], k, s, cout, out_dtype)
    # Back to NCHW so Flatten matches PyTorch element order.
    x = jnp.transpose(x, (0, 3, 1, 2))
    return x.reshape(x.shape[0], -1)


# -------------------- one-time parameter preparation ---------------------- #
def _prepare_conv(w_oihw, b, cout_expected):
    Cout, Cin, KH, KW = w_oihw.shape
    assert Cout == cout_expected and KH == KW
    # OIHW -> (KH, KW, Cin, Cout), flatten to (K, Cout), pad lanes to 128, bf16.
    w2d = jnp.transpose(w_oihw, (2, 3, 1, 0)).reshape(KH * KW * Cin, Cout)
    w2d = jnp.pad(w2d, ((0, 0), (0, NPAD - Cout))).astype(jnp.bfloat16)
    b2d = jnp.pad(b.astype(jnp.float32), (0, NPAD - Cout)).reshape(1, NPAD)
    return {"w2d": w2d, "b2d": b2d}


def prepare_params(params):
    """Hoist weight layout transform / lane padding / bf16 cast out of forward."""
    return (
        _prepare_conv(params["w1"], params["b1"], 32),
        _prepare_conv(params["w2"], params["b2"], 64),
        _prepare_conv(params["w3"], params["b3"], 64),
    )


# ----------------------- deterministic parameter init --------------------- #
def init_params(key, channels):
    def conv_init(key, cout, cin, k):
        kw_key, kb_key = jax.random.split(key)
        fan_in = cin * k * k
        bound = 1.0 / jnp.sqrt(fan_in)
        w = jax.random.uniform(kw_key, (cout, cin, k, k), jnp.float32, -bound, bound)
        b = jax.random.uniform(kb_key, (cout,), jnp.float32, -bound, bound)
        return w, b

    k1, k2, k3 = jax.random.split(key, 3)
    w1, b1 = conv_init(k1, 32, channels, 8)
    w2, b2 = conv_init(k2, 64, 32, 4)
    w3, b3 = conv_init(k3, 64, 64, 3)
    return {"w1": w1, "b1": b1, "w2": w2, "b2": b2, "w3": w3, "b3": b3}


# ------------------------------ reference --------------------------------- #
def reference_forward(x_nchw, params):
    def conv(x, w, b, s):
        y = jax.lax.conv_general_dilated(
            x, w, window_strides=(s, s), padding="VALID",
            dimension_numbers=("NCHW", "OIHW", "NCHW"))
        return jnp.maximum(y + b[None, :, None, None], 0.0)

    x = conv(x_nchw, params["w1"], params["b1"], 4)
    x = conv(x, params["w2"], params["b2"], 2)
    x = conv(x, params["w3"], params["b3"], 1)
    return x.reshape(x.shape[0], -1)


if __name__ == "__main__":
    key = jax.random.PRNGKey(0)
    k_x, k_p = jax.random.split(key)

    # Smallest spatial size compatible with the three conv strides: 36 -> 8 -> 3 -> 1.
    batch, channels, spatial = 2, 4, 36
    x = jax.random.normal(k_x, (batch, channels, spatial, spatial), jnp.float32)
    params = init_params(k_p, channels)
    layers = prepare_params(params)

    forward = jax.jit(nature_cnn_forward)
    out = jax.block_until_ready(forward(x, layers))
    ref = jax.block_until_ready(reference_forward(x, params))

    assert out.shape == (batch, 64), out.shape
    # bf16 inputs/weights with f32 accumulation -> small deviation from the
    # pure-f32 reference; tolerance sized for 3 layers of bf16 rounding.
    max_err = float(jnp.max(jnp.abs(out - ref)))
    assert jnp.allclose(out, ref, rtol=3e-2, atol=3e-2), max_err
    print("KERNEL_OK")
</pallas_src>

<mosaic_0001>
module attributes {stable_mosaic.version = 11 : i64} {
  func.func @_matmul_bias_relu_kernel(%arg0: i32, %arg1: memref<128x256xbf16, #tpu.memory_space<vmem>>, %arg2: memref<256x128xbf16, #tpu.memory_space<vmem>>, %arg3: memref<1x128xf32, #tpu.memory_space<vmem>>, %arg4: memref<128x128xbf16, #tpu.memory_space<vmem>>) attributes {dimension_semantics = [#tpu.dimension_semantics<parallel>], iteration_bounds = array<i64: 1>, scalar_prefetch = 0 : i64, scratch_operands = 0 : i64, tpu.core_type = #tpu.core_type<tc>, window_params = [{transform_indices = @transform_0, window_bounds = array<i64: 128, 256>}, {pipeline_mode = #tpu.pipeline_mode<synchronous>, transform_indices = @transform_1, window_bounds = array<i64: 256, 128>}, {pipeline_mode = #tpu.pipeline_mode<synchronous>, transform_indices = @transform_2, window_bounds = array<i64: 1, 128>}, {transform_indices = @transform_3, window_bounds = array<i64: 128, 128>}]} {
    %c0 = arith.constant 0 : index
    %c0_0 = arith.constant 0 : index
    %0 = vector.load %arg1[%c0, %c0_0] : memref<128x256xbf16, #tpu.memory_space<vmem>>, vector<128x256xbf16>
    %c0_1 = arith.constant 0 : index
    %c0_2 = arith.constant 0 : index
    %1 = vector.load %arg2[%c0_1, %c0_2] : memref<256x128xbf16, #tpu.memory_space<vmem>>, vector<256x128xbf16>
    %cst = arith.constant dense<0.000000e+00> : vector<128x128xf32>
    %2 = tpu.matmul %0, %1, %cst {dimension_numbers = #tpu.dot_dimension_numbers<[1], [0], [0], [1], [0, 0, 1, 1], [], []>} : vector<128x256xbf16>, vector<256x128xbf16>, vector<128x128xf32> -> vector<128x128xf32>
    %c0_3 = arith.constant 0 : index
    %c0_4 = arith.constant 0 : index
    %3 = vector.load %arg3[%c0_3, %c0_4] : memref<1x128xf32, #tpu.memory_space<vmem>>, vector<1x128xf32>
    %4 = vector.broadcast %3 : vector<1x128xf32> to vector<128x128xf32>
    %5 = arith.addf %2, %4 : vector<128x128xf32>
    %cst_5 = arith.constant 0.000000e+00 : f32
    %6 = vector.broadcast %cst_5 : f32 to vector<128x128xf32>
    %7 = arith.maximumf %5, %6 : vector<128x128xf32>
    %8 = arith.truncf %7 : vector<128x128xf32> to vector<128x128xbf16>
    %c0_6 = arith.constant 0 : index
    %c0_7 = arith.constant 0 : index
    %9 = vector.load %arg4[%c0_6, %c0_7] : memref<128x128xbf16, #tpu.memory_space<vmem>>, vector<128x128xbf16>
    tpu.vector_store %arg4[%c0_6, %c0_7], %8 {strides = array<i32>} : memref<128x128xbf16, #tpu.memory_space<vmem>>, vector<128x128xbf16>,
    return
  }
  func.func @transform_0(%arg0: i32) -> (i32, i32) {
    %c0_i32 = arith.constant 0 : i32
    %c0_i32_0 = arith.constant 0 : i32
    return %arg0, %c0_i32 : i32, i32
  }
  func.func @transform_1(%arg0: i32) -> (i32, i32) {
    %c0_i32 = arith.constant 0 : i32
    %c0_i32_0 = arith.constant 0 : i32
    %c0_i32_1 = arith.constant 0 : i32
    return %c0_i32, %c0_i32_0 : i32, i32
  }
  func.func @transform_2(%arg0: i32) -> (i32, i32) {
    %c0_i32 = arith.constant 0 : i32
    %c0_i32_0 = arith.constant 0 : i32
    %c0_i32_1 = arith.constant 0 : i32
    return %c0_i32, %c0_i32_0 : i32, i32
  }
  func.func @transform_3(%arg0: i32) -> (i32, i32) {
    %c0_i32 = arith.constant 0 : i32
    %c0_i32_0 = arith.constant 0 : i32
    return %arg0, %c0_i32 : i32, i32
  }
}

module attributes {stable_mosaic.version = 11 : i64} {
  func.func @_matmul_bias_relu_kernel(%arg0: i32, %arg1: memref<32x512xbf16, #tpu.memory_space<vmem>>, %arg2: memref<512x128xbf16, #tpu.memory_space<vmem>>, %arg3: memref<1x128xf32, #tpu.memory_space<vmem>>, %arg4: memref<32x128xbf16, #tpu.memory_space<vmem>>) attributes {dimension_semantics = [#tpu.dimension_semantics<parallel>], iteration_bounds = array<i64: 1>, scalar_prefetch = 0 : i64, scratch_operands = 0 : i64, tpu.core_type = #tpu.core_type<tc>, window_params = [{transform_indices = @transform_0, window_bounds = array<i64: 32, 512>}, {pipeline_mode = #tpu.pipeline_mode<synchronous>, transform_indices = @transform_1, window_bounds = array<i64: 512, 128>}, {pipeline_mode = #tpu.pipeline_mode<synchronous>, transform_indices = @transform_2, window_bounds = array<i64: 1, 128>}, {transform_indices = @transform_3, window_bounds = array<i64: 32, 128>}]} {
    %c0 = arith.constant 0 : index
    %c0_0 = arith.constant 0 : index
    %0 = vector.load %arg1[%c0, %c0_0] : memref<32x512xbf16, #tpu.memory_space<vmem>>, vector<32x512xbf16>
    %c0_1 = arith.constant 0 : index
    %c0_2 = arith.constant 0 : index
    %1 = vector.load %arg2[%c0_1, %c0_2] : memref<512x128xbf16, #tpu.memory_space<vmem>>, vector<512x128xbf16>
    %cst = arith.constant dense<0.000000e+00> : vector<32x128xf32>
    %2 = tpu.matmul %0, %1, %cst {dimension_numbers = #tpu.dot_dimension_numbers<[1], [0], [0], [1], [0, 0, 1, 1], [], []>} : vector<32x512xbf16>, vector<512x128xbf16>, vector<32x128xf32> -> vector<32x128xf32>
    %c0_3 = arith.constant 0 : index
    %c0_4 = arith.constant 0 : index
    %3 = vector.load %arg3[%c0_3, %c0_4] : memref<1x128xf32, #tpu.memory_space<vmem>>, vector<1x128xf32>
    %4 = vector.broadcast %3 : vector<1x128xf32> to vector<32x128xf32>
    %5 = arith.addf %2, %4 : vector<32x128xf32>
    %cst_5 = arith.constant 0.000000e+00 : f32
    %6 = vector.broadcast %cst_5 : f32 to vector<32x128xf32>
    %7 = arith.maximumf %5, %6 : vector<32x128xf32>
    %8 = arith.truncf %7 : vector<32x128xf32> to vector<32x128xbf16>
    %c0_6 = arith.constant 0 : index
    %c0_7 = arith.constant 0 : index
    %9 = vector.load %arg4[%c0_6, %c0_7] : memref<32x128xbf16, #tpu.memory_space<vmem>>, vector<32x128xbf16>
    tpu.vector_store %arg4[%c0_6, %c0_7], %8 {strides = array<i32>} : memref<32x128xbf16, #tpu.memory_space<vmem>>, vector<32x128xbf16>,
    return
  }
  func.func @transform_0(%arg0: i32) -> (i32, i32) {
    %c0_i32 = arith.constant 0 : i32
    %c0_i32_0 = arith.constant 0 : i32
    return %arg0, %c0_i32 : i32, i32
  }
  func.func @transform_1(%arg0: i32) -> (i32, i32) {
    %c0_i32 = arith.constant 0 : i32
    %c0_i32_0 = arith.constant 0 : i32
    %c0_i32_1 = arith.constant 0 : i32
    return %c0_i32, %c0_i32_0 : i32, i32
  }
  func.func @transform_2(%arg0: i32) -> (i32, i32) {
    %c0_i32 = arith.constant 0 : i32
    %c0_i32_0 = arith.constant 0 : i32
    %c0_i32_1 = arith.constant 0 : i32
    return %c0_i32, %c0_i32_0 : i32, i32
  }
  func.func @transform_3(%arg0: i32) -> (i32, i32) {
    %c0_i32 = arith.constant 0 : i32
    %c0_i32_0 = arith.constant 0 : i32
    return %arg0, %c0_i32 : i32, i32
  }
}

module attributes {stable_mosaic.version = 11 : i64} {
  func.func @_matmul_bias_relu_kernel(%arg0: i32, %arg1: memref<16x576xbf16, #tpu.memory_space<vmem>>, %arg2: memref<576x128xbf16, #tpu.memory_space<vmem>>, %arg3: memref<1x128xf32, #tpu.memory_space<vmem>>, %arg4: memref<16x128xf32, #tpu.memory_space<vmem>>) attributes {dimension_semantics = [#tpu.dimension_semantics<parallel>], iteration_bounds = array<i64: 1>, scalar_prefetch = 0 : i64, scratch_operands = 0 : i64, tpu.core_type = #tpu.core_type<tc>, window_params = [{transform_indices = @transform_0, window_bounds = array<i64: 16, 576>}, {pipeline_mode = #tpu.pipeline_mode<synchronous>, transform_indices = @transform_1, window_bounds = array<i64: 576, 128>}, {pipeline_mode = #tpu.pipeline_mode<synchronous>, transform_indices = @transform_2, window_bounds = array<i64: 1, 128>}, {transform_indices = @transform_3, window_bounds = array<i64: 16, 128>}]} {
    %c0 = arith.constant 0 : index
    %c0_0 = arith.constant 0 : index
    %0 = vector.load %arg1[%c0, %c0_0] : memref<16x576xbf16, #tpu.memory_space<vmem>>, vector<16x576xbf16>
    %c0_1 = arith.constant 0 : index
    %c0_2 = arith.constant 0 : index
    %1 = vector.load %arg2[%c0_1, %c0_2] : memref<576x128xbf16, #tpu.memory_space<vmem>>, vector<576x128xbf16>
    %cst = arith.constant dense<0.000000e+00> : vector<16x128xf32>
    %2 = tpu.matmul %0, %1, %cst {dimension_numbers = #tpu.dot_dimension_numbers<[1], [0], [0], [1], [0, 0, 1, 1], [], []>} : vector<16x576xbf16>, vector<576x128xbf16>, vector<16x128xf32> -> vector<16x128xf32>
    %c0_3 = arith.constant 0 : index
    %c0_4 = arith.constant 0 : index
    %3 = vector.load %arg3[%c0_3, %c0_4] : memref<1x128xf32, #tpu.memory_space<vmem>>, vector<1x128xf32>
    %4 = vector.broadcast %3 : vector<1x128xf32> to vector<16x128xf32>
    %5 = arith.addf %2, %4 : vector<16x128xf32>
    %cst_5 = arith.constant 0.000000e+00 : f32
    %6 = vector.broadcast %cst_5 : f32 to vector<16x128xf32>
    %7 = arith.maximumf %5, %6 : vector<16x128xf32>
    %c0_6 = arith.constant 0 : index
    %c0_7 = arith.constant 0 : index
    %8 = vector.load %arg4[%c0_6, %c0_7] : memref<16x128xf32, #tpu.memory_space<vmem>>, vector<16x128xf32>
    tpu.vector_store %arg4[%c0_6, %c0_7], %7 {strides = array<i32>} : memref<16x128xf32, #tpu.memory_space<vmem>>, vector<16x128xf32>,
    return
  }
  func.func @transform_0(%arg0: i32) -> (i32, i32) {
    %c0_i32 = arith.constant 0 : i32
    %c0_i32_0 = arith.constant 0 : i32
    return %arg0, %c0_i32 : i32, i32
  }
  func.func @transform_1(%arg0: i32) -> (i32, i32) {
    %c0_i32 = arith.constant 0 : i32
    %c0_i32_0 = arith.constant 0 : i32
    %c0_i32_1 = arith.constant 0 : i32
    return %c0_i32, %c0_i32_0 : i32, i32
  }
  func.func @transform_2(%arg0: i32) -> (i32, i32) {
    %c0_i32 = arith.constant 0 : i32
    %c0_i32_0 = arith.constant 0 : i32
    %c0_i32_1 = arith.constant 0 : i32
    return %c0_i32, %c0_i32_0 : i32, i32
  }
  func.func @transform_3(%arg0: i32) -> (i32, i32) {
    %c0_i32 = arith.constant 0 : i32
    %c0_i32_0 = arith.constant 0 : i32
    return %arg0, %c0_i32 : i32, i32
  }
}

</mosaic_0001>

<bundles_post_ra>
// kernel: nature_cnn_forward.3
= control target key start
LH: loop header
LB: loop body
LE: loop exit
PB: predicated region body
PF: predicated region fallthrough
CT: control target
= control target key end

     0   :  { %s825_s1 = inlined_call_operand.vmem [shape: bf16[256,128], index: 1, kind: input, shape index: {}]   ;;  %s826_s2 = inlined_call_operand.vmem [shape: f32[1,128], index: 2, kind: input, shape index: {}]   ;;  %s827_s0 = inlined_call_operand.vmem [shape: bf16[128,256], index: 0, kind: input, shape index: {}]   ;;  %s828_s3 = inlined_call_operand.vmem [shape: bf16[128,128], index: 3, kind: output, shape index: {}]  }
   0x1   :  { %v543_v0 = vld [vmem:[%s825_s1 + $0x38] sm:$0xff]  ;;  %v542_v2 = vld [vmem:[%s825_s1 + $0x30] sm:$0xff]  ;;  %v541_v4 = vld [vmem:[%s825_s1 + $0x28] sm:$0xff] }
   0x2   :  { %v551_v1 = vld [vmem:[%s825_s1 + $0x78] sm:$0xff]  ;;  %242 = vmatpush.bf16.msra.mxu0 %v543_v0  ;;  %599 = vmatpush.bf16.msra.mxu2 %v543_v0  ;;  %v550_v3 = vld [vmem:[%s825_s1 + $0x70] sm:$0xff]  ;;  %v549_v5 = vld [vmem:[%s825_s1 + $0x68] sm:$0xff] }
   0x3   :  { %291 = vmatpush.bf16.msra.mxu1 %v551_v1  ;;  %607 = vmatpush.bf16.msra.mxu3 %v551_v1  ;;  %v540_v6 = vld [vmem:[%s825_s1 + $0x20] sm:$0xff]  ;;  %v539_v8 = vld [vmem:[%s825_s1 + $0x18] sm:$0xff]  ;;  %v538_v10 = vld [vmem:[%s825_s1 + $0x10] sm:$0xff] }
   0x4   :  { %v548_v7 = vld [vmem:[%s825_s1 + $0x60] sm:$0xff]  ;;  %v547_v9 = vld [vmem:[%s825_s1 + $0x58] sm:$0xff]  ;;  %v546_v11 = vld [vmem:[%s825_s1 + $0x50] sm:$0xff] }
   0x5   :  { %v537_v12 = vld [vmem:[%s825_s1 + $0x8] sm:$0xff]  ;;  %v536_v14 = vld [vmem:[%s825_s1] sm:$0xff]  ;;  %v402_v28 = vld [vmem:[%s827_s0 + $0x10] sm:$0xf] }
   0x6   :  { %243 = vmatpush.bf16.msra.mxu0 %v542_v2  ;;  %600 = vmatpush.bf16.msra.mxu2 %v542_v2  ;;  %v545_v13 = vld [vmem:[%s825_s1 + $0x48] sm:$0xff]  ;;  %v544_v15 = vld [vmem:[%s825_s1 + $0x40] sm:$0xff]  ;;  %v523_v29 = vld [vmem:[%s827_s0 + $0x14] sm:$0xf0] }
   0x7   :  { %292 = vmatpush.bf16.msra.mxu1 %v550_v3  ;;  %608 = vmatpush.bf16.msra.mxu3 %v550_v3  ;;  %v394_v16 = vld [vmem:[%s827_s0] sm:$0xf]  ;;  %v521_v17 = vld [vmem:[%s827_s0 + $0x4] sm:$0xf0]  ;;  %v520_v20 = vld [vmem:[%s827_s0 + $0x4] sm:$0xf]  ;;  %v403_v36 = vor.u32 %v523_v29, %v402_v28 }
   0x8   :  { %v426_v18 = vld [vmem:[%s827_s0 + $0x40] sm:$0xf]  ;;  %v529_v19 = vld [vmem:[%s827_s0 + $0x44] sm:$0xf0]  ;;  %v396_v21 = vld [vmem:[%s827_s0 + $0x8] sm:$0xf0]  ;;  %v395_v24 = vor.u32 %v521_v17, %v394_v16 }
   0x9   :  { %v528_v22 = vld [vmem:[%s827_s0 + $0x44] sm:$0xf]  ;;  %v428_v23 = vld [vmem:[%s827_s0 + $0x48] sm:$0xf0]  ;;  %v427_v25 = vor.u32 %v529_v19, %v426_v18  ;;  %v399_v26 = vor.u32 %v520_v20, %v396_v21  ;;  %v434_v30 = vld [vmem:[%s827_s0 + $0x50] sm:$0xf] }
   0xa   :  { %244 = vmatpush.bf16.msra.mxu0 %v541_v4  ;;  %601 = vmatpush.bf16.msra.mxu2 %v541_v4  ;;  %v431_v27 = vor.u32 %v528_v22, %v428_v23  ;;  %v531_v31 = vld [vmem:[%s827_s0 + $0x54] sm:$0xf0]  ;;  %v522_v32 = vld [vmem:[%s827_s0 + $0x14] sm:$0xf]  ;;  %v404_v33 = vld [vmem:[%s827_s0 + $0x18] sm:$0xf0] }
   0xb   :  { %293 = vmatpush.bf16.msra.mxu1 %v549_v5  ;;  %609 = vmatpush.bf16.msra.mxu3 %v549_v5  ;;  %v530_v34 = vld [vmem:[%s827_s0 + $0x54] sm:$0xf]  ;;  %v436_v35 = vld [vmem:[%s827_s0 + $0x58] sm:$0xf0]  ;;  %v435_v37 = vor.u32 %v531_v31, %v434_v30  ;;  %v407_v38 = vor.u32 %v522_v32, %v404_v33  ;;  %v410_v40 = vld [vmem:[%s827_s0 + $0x20] sm:$0xf] }
   0xc   :  { %v439_v39 = vor.u32 %v530_v34, %v436_v35  ;;  %v525_v41 = vld [vmem:[%s827_s0 + $0x24] sm:$0xf0]  ;;  %v442_v42 = vld [vmem:[%s827_s0 + $0x60] sm:$0xf]  ;;  %v524_v44 = vld [vmem:[%s827_s0 + $0x24] sm:$0xf] }
   0xd   :  { %v533_v43 = vld [vmem:[%s827_s0 + $0x64] sm:$0xf0]  ;;  %v412_v45 = vld [vmem:[%s827_s0 + $0x28] sm:$0xf0]  ;;  %v532_v46 = vld [vmem:[%s827_s0 + $0x64] sm:$0xf]  ;;  %v411_v48 = vor.u32 %v525_v41, %v410_v40 }
   0xe   :  { %245 = vmatpush.bf16.msra.mxu0 %v540_v6  ;;  %602 = vmatpush.bf16.msra.mxu2 %v540_v6  ;;  %v444_v47 = vld [vmem:[%s827_s0 + $0x68] sm:$0xf0]  ;;  %v443_v49 = vor.u32 %v533_v43, %v442_v42  ;;  %v415_v50 = vor.u32 %v524_v44, %v412_v45  ;;  %v418_v52 = vld [vmem:[%s827_s0 + $0x30] sm:$0xf]  ;;  %v527_v53 = vld [vmem:[%s827_s0 + $0x34] sm:$0xf0] }
   0xf   :  { %294 = vmatpush.bf16.msra.mxu1 %v548_v7  ;;  %610 = vmatpush.bf16.msra.mxu3 %v548_v7  ;;  %v447_v51 = vor.u32 %v532_v46, %v444_v47  ;;  %v450_v54 = vld [vmem:[%s827_s0 + $0x70] sm:$0xf]  ;;  %v535_v55 = vld [vmem:[%s827_s0 + $0x74] sm:$0xf0]  ;;  %v526_v56 = vld [vmem:[%s827_s0 + $0x34] sm:$0xf]  ;;  %v419_v60 = vor.u32 %v527_v53, %v418_v52 }
  0x10   :  { %v420_v57 = vld [vmem:[%s827_s0 + $0x38] sm:$0xf0]  ;;  %v534_v58 = vld [vmem:[%s827_s0 + $0x74] sm:$0xf]  ;;  %v451_v61 = vor.u32 %v535_v55, %v450_v54  ;;  %v783_v1 = vld [vmem:[%s826_s2] ss:$0 sm:$0xff] }
  0x11   :  { %v452_v59 = vld [vmem:[%s827_s0 + $0x78] sm:$0xf0]  ;;  %v423_v62 = vor.u32 %v526_v56, %v420_v57 }
  0x12   :  { %246 = vmatpush.bf16.msra.mxu0 %v539_v8  ;;  %603 = vmatpush.bf16.msra.mxu2 %v539_v8  ;;  %v455_v63 = vor.u32 %v534_v58, %v452_v59 }
  0x13   :  { %295 = vmatpush.bf16.msra.mxu1 %v547_v9  ;;  %611 = vmatpush.bf16.msra.mxu3 %v547_v9 }
  0x16   :  { %247 = vmatpush.bf16.msra.mxu0 %v538_v10  ;;  %604 = vmatpush.bf16.msra.mxu2 %v538_v10 }
  0x17   :  { %296 = vmatpush.bf16.msra.mxu1 %v546_v11  ;;  %612 = vmatpush.bf16.msra.mxu3 %v546_v11 }
  0x1a   :  { %248 = vmatpush.bf16.msra.mxu0 %v537_v12  ;;  %605 = vmatpush.bf16.msra.mxu2 %v537_v12 }
  0x1b   :  { %297 = vmatpush.bf16.msra.mxu1 %v545_v13  ;;  %613 = vmatpush.bf16.msra.mxu3 %v545_v13 }
  0x1e   :  { %249 = vmatpush.bf16.msra.mxu0 %v536_v14  ;;  %606 = vmatpush.bf16.msra.mxu2 %v536_v14 }
  0x1f   :  { %298 = vmatpush.bf16.msra.mxu1 %v544_v15  ;;  %614 = vmatpush.bf16.msra.mxu3 %v544_v15 }
  0x21   :  { %250 = vmatmul.bf16.vlgmr.msra.gmra.mxu0 %v395_v24  ;;  %270 = vmatmul.bf16.vlgmr.msra.gmra.mxu2 %v427_v25 }
  0x22   :  { %299 = vmatmul.bf16.vlgmr.msra.gmra.mxu1 %v399_v26  ;;  %319 = vmatmul.bf16.vlgmr.msra.gmra.mxu3 %v431_v27 }
  0x31   :  { %255 = vmatmul.bf16.gmra.mxu0 %v403_v36  ;;  %275 = vmatmul.bf16.gmra.mxu2 %v435_v37 }
  0x32   :  { %304 = vmatmul.bf16.gmra.mxu1 %v407_v38  ;;  %324 = vmatmul.bf16.gmra.mxu3 %v439_v39 }
  0x41   :  { %260 = vmatmul.bf16.gmra.mxu0 %v411_v48  ;;  %280 = vmatmul.bf16.gmra.mxu2 %v443_v49 }
  0x42   :  { %309 = vmatmul.bf16.gmra.mxu1 %v415_v50  ;;  %329 = vmatmul.bf16.gmra.mxu3 %v447_v51 }
  0x51   :  { %265 = vmatmul.bf16.gmra.mxu0 %v419_v60  ;;  %285 = vmatmul.bf16.gmra.mxu2 %v451_v61 }
  0x52   :  { %314 = vmatmul.bf16.gmra.mxu1 %v423_v62  ;;  %334 = vmatmul.bf16.gmra.mxu3 %v455_v63 }
  0x9e   :  { %v251_v0 = vpop.f32.mrf.mxu0 }
  0x9f   :  { %v300_v2 = vpop.f32.mrf.mxu1  ;;  %v252_v3 = vadd.f32 %v783_v1, %v251_v0 }
  0xa1   :  { %v301_v7 = vadd.f32 %v300_v2, %v252_v3 }
  0xa3   :  { %v340_v12 = vmax.f32 %v301_v7, 0.0 }
  0xa4   :  { %v271_v4 = vpop.f32.mrf.mxu2 }
  0xa5   :  { %v320_v5 = vpop.f32.mrf.mxu3  ;;  %v272_v10 = vadd.f32 %v783_v1, %v271_v4 }
  0xa6   :  { %v253_v6 = vpop.f32.mrf.mxu0 }
  0xa7   :  { %v254_v8 = vadd.f32 %v783_v1, %v253_v6  ;;  %v302_v9 = vpop.f32.mrf.mxu1  ;;  %v321_v15 = vadd.f32 %v320_v5, %v272_v10 }
  0xa9   :  { %v303_v11 = vadd.f32 %v302_v9, %v254_v8  ;;  %v348_v22 = vmax.f32 %v321_v15, 0.0 }
  0xab   :  { %v341_v13 = vmax.f32 %v303_v11, 0.0 }
  0xac   :  { %v273_v14 = vpop.f32.mrf.mxu2 }
  0xad   :  { %v555_v16 = vpack.c.bf16 %v341_v13, %v340_v12  ;;  %v274_v17 = vadd.f32 %v783_v1, %v273_v14  ;;  %v322_v18 = vpop.f32.mrf.mxu3 }
  0xae   :  { %v256_v19 = vpop.f32.mrf.mxu0 }
  0xaf   :  { %556 = vst [vmem:[%s828_s3] sm:$0xff] %v555_v16   ;;  %v323_v20 = vadd.f32 %v322_v18, %v274_v17  ;;  %v305_v21 = vpop.f32.mrf.mxu1  ;;  %v257_v25 = vadd.f32 %v783_v1, %v256_v19 }
  0xb1   :  { %v349_v23 = vmax.f32 %v323_v20, 0.0  ;;  %v306_v29 = vadd.f32 %v305_v21, %v257_v25 }
  0xb3   :  { %v575_v24 = vpack.c.bf16 %v349_v23, %v348_v22  ;;  %v342_v34 = vmax.f32 %v306_v29, 0.0 }
  0xb4   :  { %v276_v26 = vpop.f32.mrf.mxu2 }
  0xb5   :  { %595 = vst [vmem:[%s828_s3 + $0x20] sm:$0xff] %v575_v24   ;;  %v325_v27 = vpop.f32.mrf.mxu3  ;;  %v277_v32 = vadd.f32 %v783_v1, %v276_v26 }
  0xb6   :  { %v258_v28 = vpop.f32.mrf.mxu0 }
  0xb7   :  { %v259_v30 = vadd.f32 %v783_v1, %v258_v28  ;;  %v307_v31 = vpop.f32.mrf.mxu1  ;;  %v326_v37 = vadd.f32 %v325_v27, %v277_v32 }
  0xb9   :  { %v308_v33 = vadd.f32 %v307_v31, %v259_v30  ;;  %v350_v44 = vmax.f32 %v326_v37, 0.0 }
  0xbb   :  { %v343_v35 = vmax.f32 %v308_v33, 0.0 }
  0xbc   :  { %v278_v36 = vpop.f32.mrf.mxu2 }
  0xbd   :  { %v560_v38 = vpack.c.bf16 %v343_v35, %v342_v34  ;;  %v279_v39 = vadd.f32 %v783_v1, %v278_v36  ;;  %v327_v40 = vpop.f32.mrf.mxu3 }
  0xbe   :  { %v261_v41 = vpop.f32.mrf.mxu0 }
  0xbf   :  { %592 = vst [vmem:[%s828_s3 + $0x8] sm:$0xff] %v560_v38   ;;  %v328_v42 = vadd.f32 %v327_v40, %v279_v39  ;;  %v310_v43 = vpop.f32.mrf.mxu1  ;;  %v262_v47 = vadd.f32 %v783_v1, %v261_v41 }
  0xc1   :  { %v351_v45 = vmax.f32 %v328_v42, 0.0  ;;  %v311_v51 = vadd.f32 %v310_v43, %v262_v47 }
  0xc3   :  { %v580_v46 = vpack.c.bf16 %v351_v45, %v350_v44  ;;  %v344_v56 = vmax.f32 %v311_v51, 0.0 }
  0xc4   :  { %v281_v48 = vpop.f32.mrf.mxu2 }
  0xc5   :  { %596 = vst [vmem:[%s828_s3 + $0x28] sm:$0xff] %v580_v46   ;;  %v330_v49 = vpop.f32.mrf.mxu3  ;;  %v282_v54 = vadd.f32 %v783_v1, %v281_v48 }
  0xc6   :  { %v263_v50 = vpop.f32.mrf.mxu0 }
  0xc7   :  { %v264_v52 = vadd.f32 %v783_v1, %v263_v50  ;;  %v312_v53 = vpop.f32.mrf.mxu1  ;;  %v331_v59 = vadd.f32 %v330_v49, %v282_v54 }
  0xc9   :  { %v313_v55 = vadd.f32 %v312_v53, %v264_v52  ;;  %v352_v3 = vmax.f32 %v331_v59, 0.0 }
  0xcb   :  { %v345_v57 = vmax.f32 %v313_v55, 0.0 }
  0xcc   :  { %v283_v58 = vpop.f32.mrf.mxu2 }
  0xcd   :  { %v565_v60 = vpack.c.bf16 %v345_v57, %v344_v56  ;;  %v284_v61 = vadd.f32 %v783_v1, %v283_v58  ;;  %v332_v62 = vpop.f32.mrf.mxu3 }
  0xce   :  { %v266_v63 = vpop.f32.mrf.mxu0 }
  0xcf   :  { %593 = vst [vmem:[%s828_s3 + $0x10] sm:$0xff] %v565_v60   ;;  %v333_v0 = vadd.f32 %v332_v62, %v284_v61  ;;  %v315_v2 = vpop.f32.mrf.mxu1  ;;  %v267_v6 = vadd.f32 %v783_v1, %v266_v63 }
  0xd1   :  { %v353_v4 = vmax.f32 %v333_v0, 0.0  ;;  %v316_v10 = vadd.f32 %v315_v2, %v267_v6 }
  0xd3   :  { %v585_v5 = vpack.c.bf16 %v353_v4, %v352_v3  ;;  %v346_v15 = vmax.f32 %v316_v10, 0.0 }
  0xd4   :  { %v286_v7 = vpop.f32.mrf.mxu2 }
  0xd5   :  { %597 = vst [vmem:[%s828_s3 + $0x30] sm:$0xff] %v585_v5   ;;  %v335_v8 = vpop.f32.mrf.mxu3  ;;  %v287_v13 = vadd.f32 %v783_v1, %v286_v7 }
  0xd6   :  { %v268_v9 = vpop.f32.mrf.mxu0 }
  0xd7   :  { %v269_v11 = vadd.f32 %v783_v1, %v268_v9  ;;  %v317_v12 = vpop.f32.mrf.mxu1  ;;  %v336_v18 = vadd.f32 %v335_v8, %v287_v13 }
  0xd9   :  { %v318_v14 = vadd.f32 %v317_v12, %v269_v11  ;;  %v354_v23 = vmax.f32 %v336_v18, 0.0 }
  0xdb   :  { %v347_v16 = vmax.f32 %v318_v14, 0.0 }
  0xdc   :  { %v288_v17 = vpop.f32.mrf.mxu2 }
  0xdd   :  { %v570_v19 = vpack.c.bf16 %v347_v16, %v346_v15  ;;  %v289_v20 = vadd.f32 %v783_v1, %v288_v17  ;;  %v337_v21 = vpop.f32.mrf.mxu3 }
  0xdf   :  { %594 = vst [vmem:[%s828_s3 + $0x18] sm:$0xff] %v570_v19   ;;  %v338_v22 = vadd.f32 %v337_v21, %v289_v20 }
  0xe1   :  { %v355_v24 = vmax.f32 %v338_v22, 0.0 }
  0xe3   :  { %v590_v25 = vpack.c.bf16 %v355_v24, %v354_v23 }
  0xe5   :  { %598 = vst [vmem:[%s828_s3 + $0x38] sm:$0xff] %v590_v25  }

// kernel: nature_cnn_forward.4
= control target key start
LH: loop header
LB: loop body
LE: loop exit
PB: predicated region body
PF: predicated region fallthrough
CT: control target
= control target key end

     0   :  { %s799_s1 = inlined_call_operand.vmem [shape: bf16[512,128], index: 1, kind: input, shape index: {}]   ;;  %s800_s2 = inlined_call_operand.vmem [shape: f32[1,128], index: 2, kind: input, shape index: {}]   ;;  %s801_s0 = inlined_call_operand.vmem [shape: bf16[32,512], index: 0, kind: input, shape index: {}]   ;;  %s802_s3 = inlined_call_operand.vmem [shape: bf16[32,128], index: 3, kind: output, shape index: {}]  }
   0x1   :  { %v589_v0 = vld [vmem:[%s799_s1 + $0x38] sm:$0xff]  ;;  %v588_v4 = vld [vmem:[%s799_s1 + $0x30] sm:$0xff]  ;;  %v587_v8 = vld [vmem:[%s799_s1 + $0x28] sm:$0xff] }
   0x2   :  { %v597_v1 = vld [vmem:[%s799_s1 + $0x78] sm:$0xff]  ;;  %322 = vmatpush.bf16.msra.mxu0 %v589_v0  ;;  %v596_v5 = vld [vmem:[%s799_s1 + $0x70] sm:$0xff]  ;;  %v595_v9 = vld [vmem:[%s799_s1 + $0x68] sm:$0xff] }
   0x3   :  { %v605_v2 = vld [vmem:[%s799_s1 + $0xb8] sm:$0xff]  ;;  %341 = vmatpush.bf16.msra.mxu1 %v597_v1  ;;  %v604_v6 = vld [vmem:[%s799_s1 + $0xb0] sm:$0xff]  ;;  %v603_v10 = vld [vmem:[%s799_s1 + $0xa8] sm:$0xff] }
   0x4   :  { %v613_v3 = vld [vmem:[%s799_s1 + $0xf8] sm:$0xff]  ;;  %360 = vmatpush.bf16.msra.mxu2 %v605_v2  ;;  %v612_v7 = vld [vmem:[%s799_s1 + $0xf0] sm:$0xff]  ;;  %v611_v11 = vld [vmem:[%s799_s1 + $0xe8] sm:$0xff] }
   0x5   :  { %379 = vmatpush.bf16.msra.mxu3 %v613_v3  ;;  %v586_v12 = vld [vmem:[%s799_s1 + $0x20] sm:$0xff]  ;;  %v585_v16 = vld [vmem:[%s799_s1 + $0x18] sm:$0xff]  ;;  %v584_v20 = vld [vmem:[%s799_s1 + $0x10] sm:$0xff] }
   0x6   :  { %323 = vmatpush.bf16.msra.mxu0 %v588_v4  ;;  %v594_v13 = vld [vmem:[%s799_s1 + $0x60] sm:$0xff]  ;;  %v593_v17 = vld [vmem:[%s799_s1 + $0x58] sm:$0xff]  ;;  %v592_v21 = vld [vmem:[%s799_s1 + $0x50] sm:$0xff] }
   0x7   :  { %342 = vmatpush.bf16.msra.mxu1 %v596_v5  ;;  %v602_v14 = vld [vmem:[%s799_s1 + $0xa0] sm:$0xff]  ;;  %v601_v18 = vld [vmem:[%s799_s1 + $0x98] sm:$0xff]  ;;  %v600_v22 = vld [vmem:[%s799_s1 + $0x90] sm:$0xff] }
   0x8   :  { %361 = vmatpush.bf16.msra.mxu2 %v604_v6  ;;  %v610_v15 = vld [vmem:[%s799_s1 + $0xe0] sm:$0xff]  ;;  %v609_v19 = vld [vmem:[%s799_s1 + $0xd8] sm:$0xff]  ;;  %v608_v23 = vld [vmem:[%s799_s1 + $0xd0] sm:$0xff] }
   0x9   :  { %380 = vmatpush.bf16.msra.mxu3 %v612_v7  ;;  %v583_v24 = vld [vmem:[%s799_s1 + $0x8] sm:$0xff]  ;;  %v582_v28 = vld [vmem:[%s799_s1] sm:$0xff]  ;;  %v576_v33 = vld [vmem:[%s801_s0 + $0xc] sm:$0xf0] }
   0xa   :  { %324 = vmatpush.bf16.msra.mxu0 %v587_v8  ;;  %v591_v25 = vld [vmem:[%s799_s1 + $0x48] sm:$0xff]  ;;  %v590_v29 = vld [vmem:[%s799_s1 + $0x40] sm:$0xff]  ;;  %v418_v35 = vld [vmem:[%s801_s0 + $0x10] sm:$0xf0] }
   0xb   :  { %343 = vmatpush.bf16.msra.mxu1 %v595_v9  ;;  %v599_v26 = vld [vmem:[%s799_s1 + $0x88] sm:$0xff]  ;;  %v598_v30 = vld [vmem:[%s799_s1 + $0x80] sm:$0xff]  ;;  %v577_v37 = vld [vmem:[%s801_s0 + $0x14] sm:$0xf0] }
   0xc   :  { %362 = vmatpush.bf16.msra.mxu2 %v603_v10  ;;  %v607_v27 = vld [vmem:[%s799_s1 + $0xc8] sm:$0xff]  ;;  %v606_v31 = vld [vmem:[%s799_s1 + $0xc0] sm:$0xff]  ;;  %v426_v39 = vld [vmem:[%s801_s0 + $0x18] sm:$0xf0] }
   0xd   :  { %381 = vmatpush.bf16.msra.mxu3 %v611_v11  ;;  %v416_v32 = vld [vmem:[%s801_s0] sm:$0xf]  ;;  %v574_v34 = vld [vmem:[%s801_s0 + $0x4] sm:$0xf]  ;;  %v424_v36 = vld [vmem:[%s801_s0 + $0x8] sm:$0xf] }
   0xe   :  { %325 = vmatpush.bf16.msra.mxu0 %v586_v12  ;;  %v575_v38 = vld [vmem:[%s801_s0 + $0xc] sm:$0xf]  ;;  %v417_v40 = vor.u32 %v576_v33, %v416_v32  ;;  %v421_v41 = vor.u32 %v574_v34, %v418_v35  ;;  %v425_v42 = vor.u32 %v577_v37, %v424_v36  ;;  %v432_v44 = vld [vmem:[%s801_s0 + $0x20] sm:$0xf]  ;;  %v580_v45 = vld [vmem:[%s801_s0 + $0x2c] sm:$0xf0] }
   0xf   :  { %344 = vmatpush.bf16.msra.mxu1 %v594_v13  ;;  %v429_v43 = vor.u32 %v575_v38, %v426_v39  ;;  %v578_v46 = vld [vmem:[%s801_s0 + $0x24] sm:$0xf]  ;;  %v434_v47 = vld [vmem:[%s801_s0 + $0x30] sm:$0xf0]  ;;  %v440_v48 = vld [vmem:[%s801_s0 + $0x28] sm:$0xf]  ;;  %v433_v52 = vor.u32 %v580_v45, %v432_v44 }
  0x10   :  { %363 = vmatpush.bf16.msra.mxu2 %v602_v14  ;;  %v581_v49 = vld [vmem:[%s801_s0 + $0x34] sm:$0xf0]  ;;  %v579_v50 = vld [vmem:[%s801_s0 + $0x2c] sm:$0xf]  ;;  %v442_v51 = vld [vmem:[%s801_s0 + $0x38] sm:$0xf0]  ;;  %v437_v53 = vor.u32 %v578_v46, %v434_v47 }
  0x11   :  { %382 = vmatpush.bf16.msra.mxu3 %v610_v15  ;;  %v441_v54 = vor.u32 %v581_v49, %v440_v48  ;;  %v445_v55 = vor.u32 %v579_v50, %v442_v51  ;;  %v625_v56 = vld [vmem:[%s800_s2] ss:$0 sm:$0xff] }
  0x12   :  { %326 = vmatpush.bf16.msra.mxu0 %v585_v16 }
  0x13   :  { %345 = vmatpush.bf16.msra.mxu1 %v593_v17 }
  0x14   :  { %364 = vmatpush.bf16.msra.mxu2 %v601_v18 }
  0x15   :  { %383 = vmatpush.bf16.msra.mxu3 %v609_v19 }
  0x16   :  { %327 = vmatpush.bf16.msra.mxu0 %v584_v20 }
  0x17   :  { %346 = vmatpush.bf16.msra.mxu1 %v592_v21 }
  0x18   :  { %365 = vmatpush.bf16.msra.mxu2 %v600_v22 }
  0x19   :  { %384 = vmatpush.bf16.msra.mxu3 %v608_v23 }
  0x1a   :  { %328 = vmatpush.bf16.msra.mxu0 %v583_v24 }
  0x1b   :  { %347 = vmatpush.bf16.msra.mxu1 %v591_v25 }
  0x1c   :  { %366 = vmatpush.bf16.msra.mxu2 %v599_v26 }
  0x1d   :  { %385 = vmatpush.bf16.msra.mxu3 %v607_v27 }
  0x1e   :  { %329 = vmatpush.bf16.msra.mxu0 %v582_v28 }
  0x1f   :  { %348 = vmatpush.bf16.msra.mxu1 %v590_v29 }
  0x20   :  { %367 = vmatpush.bf16.msra.mxu2 %v598_v30 }
  0x21   :  { %386 = vmatpush.bf16.msra.mxu3 %v606_v31  ;;  %330 = vmatmul.bf16.vlgmr.msra.gmra.mxu0 %v417_v40 }
  0x22   :  { %349 = vmatmul.bf16.vlgmr.msra.gmra.mxu1 %v421_v41 }
  0x23   :  { %368 = vmatmul.bf16.vlgmr.msra.gmra.mxu2 %v425_v42 }
  0x24   :  { %387 = vmatmul.bf16.vlgmr.msra.gmra.mxu3 %v429_v43 }
  0x31   :  { %335 = vmatmul.bf16.gmra.mxu0 %v433_v52 }
  0x32   :  { %354 = vmatmul.bf16.gmra.mxu1 %v437_v53 }
  0x33   :  { %373 = vmatmul.bf16.gmra.mxu2 %v441_v54 }
  0x34   :  { %392 = vmatmul.bf16.gmra.mxu3 %v445_v55 }
  0x9e   :  { %v331_v57 = vpop.f32.mrf.mxu0 }
  0x9f   :  { %v350_v58 = vpop.f32.mrf.mxu1  ;;  %v332_v59 = vadd.f32 %v625_v56, %v331_v57 }
  0xa1   :  { %v351_v62 = vadd.f32 %v350_v58, %v332_v59 }
  0xa6   :  { %v369_v60 = vpop.f32.mrf.mxu2  ;;  %v333_v63 = vpop.f32.mrf.mxu0 }
  0xa7   :  { %v388_v61 = vpop.f32.mrf.mxu3  ;;  %v352_v0 = vpop.f32.mrf.mxu1  ;;  %v334_v1 = vadd.f32 %v625_v56, %v333_v63  ;;  %v370_v2 = vadd.f32 %v369_v60, %v351_v62 }
  0xa9   :  { %v353_v3 = vadd.f32 %v352_v0, %v334_v1  ;;  %v389_v6 = vadd.f32 %v388_v61, %v370_v2 }
  0xab   :  { %v398_v11 = vmax.f32 %v389_v6, 0.0 }
  0xae   :  { %v371_v4 = vpop.f32.mrf.mxu2  ;;  %v336_v8 = vpop.f32.mrf.mxu0 }
  0xaf   :  { %v390_v5 = vpop.f32.mrf.mxu3  ;;  %v372_v7 = vadd.f32 %v371_v4, %v353_v3  ;;  %v355_v10 = vpop.f32.mrf.mxu1  ;;  %v337_v13 = vadd.f32 %v625_v56, %v336_v8 }
  0xb1   :  { %v391_v9 = vadd.f32 %v390_v5, %v372_v7  ;;  %v356_v17 = vadd.f32 %v355_v10, %v337_v13 }
  0xb3   :  { %v399_v12 = vmax.f32 %v391_v9, 0.0 }
  0xb5   :  { %v617_v14 = vpack.c.bf16 %v399_v12, %v398_v11 }
  0xb6   :  { %v374_v15 = vpop.f32.mrf.mxu2  ;;  %v338_v18 = vpop.f32.mrf.mxu0 }
  0xb7   :  { %v393_v16 = vpop.f32.mrf.mxu3  ;;  %618 = vst [vmem:[%s802_s3] sm:$0xff] %v617_v14   ;;  %v339_v19 = vadd.f32 %v625_v56, %v338_v18  ;;  %v375_v20 = vadd.f32 %v374_v15, %v356_v17  ;;  %v357_v21 = vpop.f32.mrf.mxu1 }
  0xb9   :  { %v358_v22 = vadd.f32 %v357_v21, %v339_v19  ;;  %v394_v24 = vadd.f32 %v393_v16, %v375_v20 }
  0xbb   :  { %v400_v28 = vmax.f32 %v394_v24, 0.0 }
  0xbe   :  { %v376_v23 = vpop.f32.mrf.mxu2 }
  0xbf   :  { %v377_v25 = vadd.f32 %v376_v23, %v358_v22  ;;  %v395_v26 = vpop.f32.mrf.mxu3 }
  0xc1   :  { %v396_v27 = vadd.f32 %v395_v26, %v377_v25 }
  0xc3   :  { %v401_v29 = vmax.f32 %v396_v27, 0.0 }
  0xc5   :  { %v622_v30 = vpack.c.bf16 %v401_v29, %v400_v28 }
  0xc7   :  { %624 = vst [vmem:[%s802_s3 + $0x8] sm:$0xff] %v622_v30  }

// kernel: nature_cnn_forward.5
= control target key start
LH: loop header
LB: loop body
LE: loop exit
PB: predicated region body
PF: predicated region fallthrough
CT: control target
= control target key end

     0   :  { %vm338_vm0 = vcmask 523264   ;;  %s794_s1 = inlined_call_operand.vmem [shape: bf16[576,128], index: 1, kind: input, shape index: {}]   ;;  %s795_s2 = inlined_call_operand.vmem [shape: f32[1,128], index: 2, kind: input, shape index: {}]   ;;  %s796_s0 = inlined_call_operand.vmem [shape: bf16[16,576], index: 0, kind: input, shape index: {}]   ;;  %s797_s3 = inlined_call_operand.vmem [shape: f32[16,128], index: 3, kind: output, shape index: {}]  }
   0x1   :  { %v597_v0 = vld [vmem:[%s794_s1 + $0x38] sm:$0xff]  ;;  %v596_v4 = vld [vmem:[%s794_s1 + $0x30] sm:$0xff]  ;;  %v595_v8 = vld [vmem:[%s794_s1 + $0x28] sm:$0xff] }
   0x2   :  { %v613_v1 = vld [vmem:[%s794_s1 + $0xb8] sm:$0xff]  ;;  %342 = vmatpush.bf16.msra.mxu0 %v597_v0  ;;  %v612_v5 = vld [vmem:[%s794_s1 + $0xb0] sm:$0xff]  ;;  %v611_v9 = vld [vmem:[%s794_s1 + $0xa8] sm:$0xff] }
   0x3   :  { %v621_v2 = vld [vmem:[%s794_s1 + $0xf8] sm:$0xff]  ;;  %370 = vmatpush.bf16.msra.mxu2 %v613_v1  ;;  %v620_v6 = vld [vmem:[%s794_s1 + $0xf0] sm:$0xff]  ;;  %v619_v10 = vld [vmem:[%s794_s1 + $0xe8] sm:$0xff] }
   0x4   :  { %v605_v3 = vld [vmem:[%s794_s1 + $0x78] sm:$0xff]  ;;  %384 = vmatpush.bf16.msra.mxu3 %v621_v2  ;;  %v604_v7 = vld [vmem:[%s794_s1 + $0x70] sm:$0xff]  ;;  %v603_v11 = vld [vmem:[%s794_s1 + $0x68] sm:$0xff] }
   0x5   :  { %356 = vmatpush.bf16.msra.mxu1 %v605_v3  ;;  %v594_v12 = vld [vmem:[%s794_s1 + $0x20] sm:$0xff]  ;;  %v593_v16 = vld [vmem:[%s794_s1 + $0x18] sm:$0xff]  ;;  %v592_v20 = vld [vmem:[%s794_s1 + $0x10] sm:$0xff] }
   0x6   :  { %343 = vmatpush.bf16.msra.mxu0 %v596_v4  ;;  %v610_v13 = vld [vmem:[%s794_s1 + $0xa0] sm:$0xff]  ;;  %v609_v17 = vld [vmem:[%s794_s1 + $0x98] sm:$0xff]  ;;  %v608_v21 = vld [vmem:[%s794_s1 + $0x90] sm:$0xff] }
   0x7   :  { %371 = vmatpush.bf16.msra.mxu2 %v612_v5  ;;  %v618_v14 = vld [vmem:[%s794_s1 + $0xe0] sm:$0xff]  ;;  %v617_v18 = vld [vmem:[%s794_s1 + $0xd8] sm:$0xff]  ;;  %v616_v22 = vld [vmem:[%s794_s1 + $0xd0] sm:$0xff] }
   0x8   :  { %385 = vmatpush.bf16.msra.mxu3 %v620_v6  ;;  %v602_v15 = vld [vmem:[%s794_s1 + $0x60] sm:$0xff]  ;;  %v601_v19 = vld [vmem:[%s794_s1 + $0x58] sm:$0xff]  ;;  %v600_v23 = vld [vmem:[%s794_s1 + $0x50] sm:$0xff] }
   0x9   :  { %357 = vmatpush.bf16.msra.mxu1 %v604_v7  ;;  %v591_v24 = vld [vmem:[%s794_s1 + $0x8] sm:$0xff]  ;;  %v590_v28 = vld [vmem:[%s794_s1] sm:$0xff]  ;;  %v587_v33 = vld [vmem:[%s796_s0 + $0x10] sm:$0xf0] }
   0xa   :  { %344 = vmatpush.bf16.msra.mxu0 %v595_v8  ;;  %v607_v25 = vld [vmem:[%s794_s1 + $0x88] sm:$0xff]  ;;  %v606_v29 = vld [vmem:[%s794_s1 + $0x80] sm:$0xff]  ;;  %v588_v35 = vld [vmem:[%s796_s0 + $0x18] sm:$0xf0] }
   0xb   :  { %372 = vmatpush.bf16.msra.mxu2 %v611_v9  ;;  %v615_v26 = vld [vmem:[%s794_s1 + $0xc8] sm:$0xff]  ;;  %v614_v30 = vld [vmem:[%s794_s1 + $0xc0] sm:$0xff]  ;;  %v424_v39 = vld [vmem:[%s796_s0 + $0x14] sm:$0xf0] }
   0xc   :  { %386 = vmatpush.bf16.msra.mxu3 %v619_v10  ;;  %v599_v27 = vld [vmem:[%s794_s1 + $0x48] sm:$0xff]  ;;  %v598_v31 = vld [vmem:[%s794_s1 + $0x40] sm:$0xff]  ;;  %v625_v40 = vld [vmem:[%s794_s1 + $0x118] sm:$0xff] }
   0xd   :  { %358 = vmatpush.bf16.msra.mxu1 %v603_v11  ;;  %v422_v32 = vld [vmem:[%s796_s0] sm:$0xf]  ;;  %v430_v34 = vld [vmem:[%s796_s0 + $0x8] sm:$0xf]  ;;  %v586_v36 = vld [vmem:[%s796_s0 + $0xc] sm:$0xf] }
   0xe   :  { %345 = vmatpush.bf16.msra.mxu0 %v594_v12  ;;  %v432_v37 = vld [vmem:[%s796_s0 + $0x1c] sm:$0xf0]  ;;  %v585_v38 = vld [vmem:[%s796_s0 + $0x4] sm:$0xf]  ;;  %v423_v41 = vor.u32 %v587_v33, %v422_v32  ;;  %v431_v42 = vor.u32 %v588_v35, %v430_v34  ;;  %v624_v45 = vld [vmem:[%s794_s1 + $0x110] sm:$0xff] }
   0xf   :  { %373 = vmatpush.bf16.msra.mxu2 %v610_v13  ;;  %v435_v43 = vor.u32 %v586_v36, %v432_v37  ;;  %v427_v44 = vor.u32 %v585_v38, %v424_v39  ;;  %v623_v46 = vld [vmem:[%s794_s1 + $0x108] sm:$0xff]  ;;  %v622_v47 = vld [vmem:[%s794_s1 + $0x100] sm:$0xff]  ;;  %v438_v48 = vld [vmem:[%s796_s0 + $0x10] sm:$0xf] }
  0x10   :  { %387 = vmatpush.bf16.msra.mxu3 %v618_v14  ;;  %v589_v49 = vld [vmem:[%s796_s0 + $0x20] sm:$0xf0]  ;;  %v626_v52 = vld [vmem:[%s795_s2] ss:$0 sm:$0xff] }
  0x11   :  { %359 = vmatpush.bf16.msra.mxu1 %v602_v15  ;;  %v439_v50 = vor.u32 %v589_v49, %v438_v48 }
  0x12   :  { %346 = vmatpush.bf16.msra.mxu0 %v593_v16 }
  0x13   :  { %374 = vmatpush.bf16.msra.mxu2 %v609_v17 }
  0x14   :  { %388 = vmatpush.bf16.msra.mxu3 %v617_v18 }
  0x15   :  { %360 = vmatpush.bf16.msra.mxu1 %v601_v19 }
  0x16   :  { %347 = vmatpush.bf16.msra.mxu0 %v592_v20 }
  0x17   :  { %375 = vmatpush.bf16.msra.mxu2 %v608_v21 }
  0x18   :  { %389 = vmatpush.bf16.msra.mxu3 %v616_v22 }
  0x19   :  { %361 = vmatpush.bf16.msra.mxu1 %v600_v23 }
  0x1a   :  { %348 = vmatpush.bf16.msra.mxu0 %v591_v24 }
  0x1b   :  { %376 = vmatpush.bf16.msra.mxu2 %v607_v25 }
  0x1c   :  { %390 = vmatpush.bf16.msra.mxu3 %v615_v26 }
  0x1d   :  { %362 = vmatpush.bf16.msra.mxu1 %v599_v27 }
  0x1e   :  { %349 = vmatpush.bf16.msra.mxu0 %v590_v28 }
  0x1f   :  { %377 = vmatpush.bf16.msra.mxu2 %v606_v29 }
  0x20   :  { %391 = vmatpush.bf16.msra.mxu3 %v614_v30 }
  0x21   :  { %363 = vmatpush.bf16.msra.mxu1 %v598_v31  ;;  %350 = vmatmul.bf16.vlgmr.msra.gmra.mxu0 %v423_v41 }
  0x22   :  { %402 = vmatpush.bf16.msrb.mxu0 %v625_v40  ;;  %378 = vmatmul.bf16.vlgmr.msra.gmra.mxu2 %v431_v42 }
  0x23   :  { %392 = vmatmul.bf16.vlgmr.msra.gmra.mxu3 %v435_v43 }
  0x24   :  { %364 = vmatmul.bf16.vlgmr.msra.gmra.mxu1 %v427_v44 }
  0x26   :  { %403 = vmatpush.bf16.msrb.mxu0 %v624_v45 }
  0x2a   :  { %404 = vmatpush.bf16.msrb.mxu0 %v623_v46 }
  0x2e   :  { %405 = vmatpush.bf16.msrb.mxu0 %v622_v47 }
  0x31   :  { %584 = vmatmul.msk.bf16.vlgmr.msrb.gmra.mxu0 %vm338_vm0, %v439_v50 }
  0x9e   :  { %v351_v51 = vpop.f32.mrf.mxu0 }
  0x9f   :  { %v352_v54 = vadd.f32 %v626_v52, %v351_v51 }
  0xa1   :  { %v365_v53 = vpop.f32.mrf.mxu1 }
  0xa2   :  { %v366_v57 = vadd.f32 %v365_v53, %v352_v54 }
  0xa5   :  { %v379_v55 = vpop.f32.mrf.mxu2 }
  0xa6   :  { %v353_v56 = vpop.f32.mrf.mxu0  ;;  %v380_v58 = vadd.f32 %v379_v55, %v366_v57  ;;  %v393_v59 = vpop.f32.mrf.mxu3 }
  0xa7   :  { %v354_v60 = vadd.f32 %v626_v52, %v353_v56 }
  0xa8   :  { %v394_v62 = vadd.f32 %v393_v59, %v380_v58 }
  0xa9   :  { %v367_v61 = vpop.f32.mrf.mxu1 }
  0xaa   :  { %v368_v1 = vadd.f32 %v367_v61, %v354_v60 }
  0xad   :  { %v381_v63 = vpop.f32.mrf.mxu2 }
  0xae   :  { %v407_v0 = vpop.f32.mrf.mxu0  ;;  %v382_v3 = vadd.f32 %v381_v63, %v368_v1  ;;  %v395_v5 = vpop.f32.mrf.mxu3 }
  0xaf   :  { %v408_v2 = vadd.f32 %v407_v0, %v394_v62 }
  0xb0   :  { %v396_v6 = vadd.f32 %v395_v5, %v382_v3 }
  0xb1   :  { %v412_v4 = vmax.f32 %v408_v2, 0.0 }
  0xb3   :  { %414 = vst [vmem:[%s797_s3] sm:$0xff] %v412_v4 }
  0xb6   :  { %v409_v7 = vpop.f32.mrf.mxu0 }
  0xb7   :  { %v410_v8 = vadd.f32 %v409_v7, %v396_v6 }
  0xb9   :  { %v413_v9 = vmax.f32 %v410_v8, 0.0 }
  0xbb   :  { %415 = vst [vmem:[%s797_s3 + $0x8] sm:$0xff] %v413_v9 }

</bundles_post_ra>
